<compile_context>
chip_gen: v7x
topology: tpu7x:2x2x1
jax: 0.10.0
libtpu: 0.0.40
codegen_flags: <defaults>
</compile_context>

<pallas_src>
import jax
import jax.numpy as jnp
from jax.experimental import pallas as pl
from jax.experimental.pallas import tpu as pltpu

OBS_DIM = 8      # env.observation_space.shape[0] for LunarLander
N_ACTIONS = 4    # env.action_space.n for LunarLander
HIDDEN = 128
HIDDEN2 = 2 * HIDDEN        # fused policy+value hidden width (256)
HEAD_W = 8                  # fused head output width (4 logits + 1 value + 3 pad)


def _round_up(n, m):
    return (n + m - 1) // m * m


def _policy_kernel(x_ref, wh_ref, bh_ref, wo_ref, bo_ref, out_ref):
    x = x_ref[...]                                                  # (TB, OBS)

    # fused hidden layer: [policy | value] -> (TB, 256), relu
    h = jnp.dot(x, wh_ref[...], preferred_element_type=jnp.float32) + bh_ref[...]
    h = jnp.maximum(h, 0.0)

    # fused heads: cols 0:4 = action logits, col 4 = state value, cols 5:8 = 0
    z = jnp.dot(h, wo_ref[...], preferred_element_type=jnp.float32) + bo_ref[...]

    col = jax.lax.broadcasted_iota(jnp.int32, z.shape, 1)
    is_act = col < N_ACTIONS
    # masked, max-stabilized softmax over the 4 action columns (whole-vreg ops,
    # no lane slicing); exp(-inf) == 0 zeroes the non-action columns.
    m = jnp.max(jnp.where(is_act, z, -jnp.inf), axis=-1, keepdims=True)
    e = jnp.exp(jnp.where(is_act, z - m, -jnp.inf))
    probs = e * pl.reciprocal(jnp.sum(e, axis=-1, keepdims=True), approx=False)
    value = jnp.where(col == N_ACTIONS, z, 0.0)

    out_ref[...] = probs + value                                    # (TB, 8)


def fuse_params(p):
    """Pack per-layer PyTorch-style params into the fused kernel tensors."""
    w_hidden = jnp.concatenate([p["wp"], p["wv"]], axis=1)          # (8, 256)
    b_hidden = jnp.concatenate([p["bp"], p["bv"]], axis=1)          # (1, 256)
    w_heads = jnp.zeros((HIDDEN2, HEAD_W), jnp.float32)
    w_heads = w_heads.at[:HIDDEN, :N_ACTIONS].set(p["wa"])          # actor from h_p
    w_heads = w_heads.at[HIDDEN:, N_ACTIONS:N_ACTIONS + 1].set(p["wvh"])  # critic from h_v
    b_heads = jnp.zeros((1, HEAD_W), jnp.float32)
    b_heads = b_heads.at[:, :N_ACTIONS].set(p["ba"])
    b_heads = b_heads.at[:, N_ACTIONS:N_ACTIONS + 1].set(p["bvh"])
    return w_hidden, b_hidden, w_heads, b_heads


def policy_forward(x, fused_params, block_b=512):
    """x: (B, OBS_DIM) f32. Returns (action_prob (B, N_ACTIONS), state_values (B, 1))."""
    w_hidden, b_hidden, w_heads, b_heads = fused_params
    B = x.shape[0]
    TB = min(block_b, _round_up(max(B, 1), 8))      # batch tile, multiple of 8 sublanes
    B_pad = _round_up(B, TB)
    if B_pad != B:
        x = jnp.pad(x, ((0, B_pad - B), (0, 0)))

    out = pl.pallas_call(
        _policy_kernel,
        out_shape=jax.ShapeDtypeStruct((B_pad, HEAD_W), jnp.float32),
        grid=(B_pad // TB,),
        in_specs=[
            pl.BlockSpec((TB, OBS_DIM), lambda i: (i, 0)),          # x: blocked on rows
            pl.BlockSpec((OBS_DIM, HIDDEN2), lambda i: (0, 0)),     # resident weights
            pl.BlockSpec((1, HIDDEN2), lambda i: (0, 0)),
            pl.BlockSpec((HIDDEN2, HEAD_W), lambda i: (0, 0)),
            pl.BlockSpec((1, HEAD_W), lambda i: (0, 0)),
        ],
        out_specs=pl.BlockSpec((TB, HEAD_W), lambda i: (i, 0)),
        compiler_params=pltpu.CompilerParams(
            dimension_semantics=("parallel",)),
    )(x, w_hidden, b_hidden, w_heads, b_heads)

    probs = out[:B, :N_ACTIONS]
    values = out[:B, N_ACTIONS:N_ACTIONS + 1]
    return probs, values


def init_params(key):
    """Deterministic init mimicking PyTorch Linear default U(-1/sqrt(fan_in), 1/sqrt(fan_in))."""
    ks = jax.random.split(key, 8)

    def linear(kw, kb, fan_in, fan_out):
        bound = 1.0 / jnp.sqrt(jnp.asarray(fan_in, jnp.float32))
        w = jax.random.uniform(kw, (fan_in, fan_out), jnp.float32, -bound, bound)
        b = jax.random.uniform(kb, (1, fan_out), jnp.float32, -bound, bound)
        return w, b

    wp, bp = linear(ks[0], ks[1], OBS_DIM, HIDDEN)
    wv, bv = linear(ks[2], ks[3], OBS_DIM, HIDDEN)
    wa, ba = linear(ks[4], ks[5], HIDDEN, N_ACTIONS)
    wvh, bvh = linear(ks[6], ks[7], HIDDEN, 1)
    return dict(wp=wp, bp=bp, wv=wv, bv=bv, wa=wa, ba=ba, wvh=wvh, bvh=bvh)


def _reference(x, p):
    h_p = jnp.maximum(x @ p["wp"] + p["bp"], 0.0)
    h_v = jnp.maximum(x @ p["wv"] + p["bv"], 0.0)
    probs = jax.nn.softmax(h_p @ p["wa"] + p["ba"], axis=-1)
    values = h_v @ p["wvh"] + p["bvh"]
    return probs, values


if __name__ == "__main__":
    key = jax.random.PRNGKey(0)
    k_param, k_x1, k_x2 = jax.random.split(key, 3)
    params = init_params(k_param)
    fused = fuse_params(params)

    # main small-shape check
    B = 8
    x = jax.random.normal(k_x1, (B, OBS_DIM), dtype=jnp.float32)
    probs, values = policy_forward(x, fused)
    jax.block_until_ready((probs, values))

    ref_probs, ref_values = _reference(x, params)
    assert probs.shape == (B, N_ACTIONS) and values.shape == (B, 1)
    assert jnp.allclose(probs, ref_probs, atol=1e-5, rtol=1e-5)
    assert jnp.allclose(values, ref_values, atol=1e-5, rtol=1e-5)
    assert jnp.allclose(jnp.sum(probs, axis=-1), 1.0, atol=1e-5)

    # exercise the batch grid + padding path (multiple tiles, ragged batch)
    B2 = 100
    x2 = jax.random.normal(k_x2, (B2, OBS_DIM), dtype=jnp.float32)
    probs2, values2 = policy_forward(x2, fused, block_b=32)
    jax.block_until_ready((probs2, values2))
    ref_probs2, ref_values2 = _reference(x2, params)
    assert probs2.shape == (B2, N_ACTIONS) and values2.shape == (B2, 1)
    assert jnp.allclose(probs2, ref_probs2, atol=1e-5, rtol=1e-5)
    assert jnp.allclose(values2, ref_values2, atol=1e-5, rtol=1e-5)

    print("KERNEL_OK")
</pallas_src>

<mosaic_0001>
module attributes {stable_mosaic.version = 11 : i64} {
  func.func @_policy_kernel(%arg0: i32, %arg1: memref<8x8xf32, #tpu.memory_space<vmem>>, %arg2: memref<8x256xf32, #tpu.memory_space<vmem>>, %arg3: memref<1x256xf32, #tpu.memory_space<vmem>>, %arg4: memref<256x8xf32, #tpu.memory_space<vmem>>, %arg5: memref<1x8xf32, #tpu.memory_space<vmem>>, %arg6: memref<8x8xf32, #tpu.memory_space<vmem>>) attributes {dimension_semantics = [#tpu.dimension_semantics<parallel>], iteration_bounds = array<i64: 1>, scalar_prefetch = 0 : i64, scratch_operands = 0 : i64, tpu.core_type = #tpu.core_type<tc>, window_params = [{transform_indices = @transform_0, window_bounds = array<i64: 8, 8>}, {pipeline_mode = #tpu.pipeline_mode<synchronous>, transform_indices = @transform_1, window_bounds = array<i64: 8, 256>}, {pipeline_mode = #tpu.pipeline_mode<synchronous>, transform_indices = @transform_2, window_bounds = array<i64: 1, 256>}, {pipeline_mode = #tpu.pipeline_mode<synchronous>, transform_indices = @transform_3, window_bounds = array<i64: 256, 8>}, {pipeline_mode = #tpu.pipeline_mode<synchronous>, transform_indices = @transform_4, window_bounds = array<i64: 1, 8>}, {transform_indices = @transform_5, window_bounds = array<i64: 8, 8>}]} {
    %c0 = arith.constant 0 : index
    %c0_0 = arith.constant 0 : index
    %0 = vector.load %arg1[%c0, %c0_0] : memref<8x8xf32, #tpu.memory_space<vmem>>, vector<8x8xf32>
    %c0_1 = arith.constant 0 : index
    %c0_2 = arith.constant 0 : index
    %1 = vector.load %arg2[%c0_1, %c0_2] : memref<8x256xf32, #tpu.memory_space<vmem>>, vector<8x256xf32>
    %cst = arith.constant dense<0.000000e+00> : vector<8x256xf32>
    %2 = tpu.matmul %0, %1, %cst {dimension_numbers = #tpu.dot_dimension_numbers<[1], [0], [0], [1], [0, 0, 1, 1], [], []>} : vector<8x8xf32>, vector<8x256xf32>, vector<8x256xf32> -> vector<8x256xf32>
    %c0_3 = arith.constant 0 : index
    %c0_4 = arith.constant 0 : index
    %3 = vector.load %arg3[%c0_3, %c0_4] : memref<1x256xf32, #tpu.memory_space<vmem>>, vector<1x256xf32>
    %4 = vector.broadcast %3 : vector<1x256xf32> to vector<8x256xf32>
    %5 = arith.addf %2, %4 : vector<8x256xf32>
    %cst_5 = arith.constant 0.000000e+00 : f32
    %6 = vector.broadcast %cst_5 : f32 to vector<8x256xf32>
    %7 = arith.maximumf %5, %6 : vector<8x256xf32>
    %c0_6 = arith.constant 0 : index
    %c0_7 = arith.constant 0 : index
    %8 = vector.load %arg4[%c0_6, %c0_7] : memref<256x8xf32, #tpu.memory_space<vmem>>, vector<256x8xf32>
    %cst_8 = arith.constant dense<0.000000e+00> : vector<8x8xf32>
    %9 = tpu.matmul %7, %8, %cst_8 {dimension_numbers = #tpu.dot_dimension_numbers<[1], [0], [0], [1], [0, 0, 1, 1], [], []>} : vector<8x256xf32>, vector<256x8xf32>, vector<8x8xf32> -> vector<8x8xf32>
    %c0_9 = arith.constant 0 : index
    %c0_10 = arith.constant 0 : index
    %10 = vector.load %arg5[%c0_9, %c0_10] : memref<1x8xf32, #tpu.memory_space<vmem>>, vector<1x8xf32>
    %11 = vector.broadcast %10 : vector<1x8xf32> to vector<8x8xf32>
    %12 = arith.addf %9, %11 : vector<8x8xf32>
    %13 = tpu.iota {dimensions = array<i32: 1>} : vector<8x8xi32>
    %c4_i32 = arith.constant 4 : i32
    %14 = vector.broadcast %c4_i32 : i32 to vector<8x8xi32>
    %15 = arith.cmpi slt, %13, %14 : vector<8x8xi32>
    %cst_11 = arith.constant 0xFF800000 : f32
    %16 = vector.broadcast %cst_11 : f32 to vector<8x8xf32>
    %17 = arith.select %15, %12, %16 : vector<8x8xi1>, vector<8x8xf32>
    %cst_12 = arith.constant dense<0xFF800000> : vector<8xf32>
    %18 = vector.multi_reduction <maximumf>, %17, %cst_12 [1] : vector<8x8xf32> to vector<8xf32>
    %19 = vector.shape_cast %18 : vector<8xf32> to vector<8x1xf32>
    %20 = vector.broadcast %19 : vector<8x1xf32> to vector<8x8xf32>
    %21 = arith.subf %12, %20 : vector<8x8xf32>
    %cst_13 = arith.constant 0xFF800000 : f32
    %22 = vector.broadcast %cst_13 : f32 to vector<8x8xf32>
    %23 = arith.select %15, %21, %22 : vector<8x8xi1>, vector<8x8xf32>
    %24 = math.exp %23 : vector<8x8xf32>
    %cst_14 = arith.constant dense<0.000000e+00> : vector<8xf32>
    %25 = vector.multi_reduction <add>, %24, %cst_14 [1] : vector<8x8xf32> to vector<8xf32>
    %26 = vector.shape_cast %25 : vector<8xf32> to vector<8x1xf32>
    %27 = tpu.reciprocal %26 : vector<8x1xf32> -> vector<8x1xf32>
    %28 = vector.broadcast %27 : vector<8x1xf32> to vector<8x8xf32>
    %29 = arith.mulf %24, %28 : vector<8x8xf32>
    %c4_i32_15 = arith.constant 4 : i32
    %30 = vector.broadcast %c4_i32_15 : i32 to vector<8x8xi32>
    %31 = arith.cmpi eq, %13, %30 : vector<8x8xi32>
    %cst_16 = arith.constant 0.000000e+00 : f32
    %32 = vector.broadcast %cst_16 : f32 to vector<8x8xf32>
    %33 = arith.select %31, %12, %32 : vector<8x8xi1>, vector<8x8xf32>
    %34 = arith.addf %29, %33 : vector<8x8xf32>
    %c0_17 = arith.constant 0 : index
    %c0_18 = arith.constant 0 : index
    %35 = vector.load %arg6[%c0_17, %c0_18] : memref<8x8xf32, #tpu.memory_space<vmem>>, vector<8x8xf32>
    tpu.vector_store %arg6[%c0_17, %c0_18], %34 {strides = array<i32>} : memref<8x8xf32, #tpu.memory_space<vmem>>, vector<8x8xf32>,
    return
  }
  func.func @transform_0(%arg0: i32) -> (i32, i32) {
    %c0_i32 = arith.constant 0 : i32
    %c0_i32_0 = arith.constant 0 : i32
    return %arg0, %c0_i32 : i32, i32
  }
  func.func @transform_1(%arg0: i32) -> (i32, i32) {
    %c0_i32 = arith.constant 0 : i32
    %c0_i32_0 = arith.constant 0 : i32
    %c0_i32_1 = arith.constant 0 : i32
    return %c0_i32, %c0_i32_0 : i32, i32
  }
  func.func @transform_2(%arg0: i32) -> (i32, i32) {
    %c0_i32 = arith.constant 0 : i32
    %c0_i32_0 = arith.constant 0 : i32
    %c0_i32_1 = arith.constant 0 : i32
    return %c0_i32, %c0_i32_0 : i32, i32
  }
  func.func @transform_3(%arg0: i32) -> (i32, i32) {
    %c0_i32 = arith.constant 0 : i32
    %c0_i32_0 = arith.constant 0 : i32
    %c0_i32_1 = arith.constant 0 : i32
    return %c0_i32, %c0_i32_0 : i32, i32
  }
  func.func @transform_4(%arg0: i32) -> (i32, i32) {
    %c0_i32 = arith.constant 0 : i32
    %c0_i32_0 = arith.constant 0 : i32
    %c0_i32_1 = arith.constant 0 : i32
    return %c0_i32, %c0_i32_0 : i32, i32
  }
  func.func @transform_5(%arg0: i32) -> (i32, i32) {
    %c0_i32 = arith.constant 0 : i32
    %c0_i32_0 = arith.constant 0 : i32
    return %arg0, %c0_i32 : i32, i32
  }
}

</mosaic_0001>

<bundles_post_ra>
// kernel: tpu_custom_call.1
= control target key start
LH: loop header
LB: loop body
LE: loop exit
PB: predicated region body
PF: predicated region fallthrough
CT: control target
= control target key end

     0   :  { %vm36_vm0 = vcmask 64512   ;;  %v355_v3 = vmov 0.0   ;;  %s514_s0 = inlined_call_operand.vmem [shape: f32[8,8], index: 0, kind: input, shape index: {}]   ;;  %s515_s1 = inlined_call_operand.vmem [shape: f32[8,256], index: 1, kind: input, shape index: {}]   ;;  %s516_s2 = inlined_call_operand.vmem [shape: f32[1,256], index: 2, kind: input, shape index: {}]   ;;  %s517_s3 = inlined_call_operand.vmem [shape: f32[256,8], index: 3, kind: input, shape index: {}]   ;;  %s518_s4 = inlined_call_operand.vmem [shape: f32[1,8], index: 4, kind: input, shape index: {}]   ;;  %s519_s5 = inlined_call_operand.hbm [shape: f32[8,8], index: 5, kind: output, shape index: {}]  }
   0x1   :  { %v23_v0 = vld [vmem:[%s515_s1 + $0x8] sm:$0xff]  ;;  %v22_v1 = vld [vmem:[%s515_s1] sm:$0xff]  ;;  %104 = vmatprep.mubr.f32.mxu0 %v355_v3  ;;  %v131_v9 = vld [vmem:[%s517_s3 + $0x90] sm:$0xff] }
   0x2   :  { %v21_v2 = vld [vmem:[%s514_s0] sm:$0xff]  ;;  %40 = vmatprep.subr.mxu0 %v23_v0  ;;  %v130_v5 = vld [vmem:[%s517_s3 + $0x88] sm:$0xff]  ;;  %v132_v10 = vld [vmem:[%s517_s3 + $0x98] sm:$0xff] }
   0x3   :  { %v129_v4 = vld [vmem:[%s517_s3 + $0x80] sm:$0xff]  ;;  %41 = vmatpush1.msra.mxu0 %v22_v1  ;;  %v114_v8 = vld [vmem:[%s517_s3 + $0x8] sm:$0xff]  ;;  %v297_v12 = vpack.c.bf16 %v132_v10, %v131_v9  ;;  %v115_v13 = vld [vmem:[%s517_s3 + $0x10] sm:$0xff] }
   0x4   :  { %v113_v6 = vld [vmem:[%s517_s3] sm:$0xff]  ;;  %v293_v7 = vpack.c.bf16 %v130_v5, %v129_v4  ;;  %256 = vmatmul.mubr.msk.f32.vlgmr.msra.gmra.mrb[0].mxu0 %vm36_vm0, %v21_v2  ;;  %v116_v14 = vld [vmem:[%s517_s3 + $0x18] sm:$0xff]  ;;  %v134_v16 = vld [vmem:[%s517_s3 + $0xa8] sm:$0xff] }
   0x5   :  { %v295_v11 = vpack.c.bf16 %v114_v8, %v113_v6  ;;  %v133_v15 = vld [vmem:[%s517_s3 + $0xa0] sm:$0xff]  ;;  %v299_v17 = vpack.c.bf16 %v116_v14, %v115_v13  ;;  %v118_v20 = vld [vmem:[%s517_s3 + $0x28] sm:$0xff]  ;;  %v135_v21 = vld [vmem:[%s517_s3 + $0xb0] sm:$0xff] }
   0x6   :  { %294 = vmatprep.subr.bf16.mxu1 %v293_v7  ;;  %v301_v18 = vpack.c.bf16 %v134_v16, %v133_v15  ;;  %v117_v19 = vld [vmem:[%s517_s3 + $0x20] sm:$0xff]  ;;  %v136_v22 = vld [vmem:[%s517_s3 + $0xb8] sm:$0xff]  ;;  %v119_v25 = vld [vmem:[%s517_s3 + $0x30] sm:$0xff] }
   0x7   :  { %296 = vmatpush3.bf16.msra.mxu1 %v295_v11  ;;  %v303_v23 = vpack.c.bf16 %v118_v20, %v117_v19  ;;  %v305_v24 = vpack.c.bf16 %v136_v22, %v135_v21  ;;  %v120_v26 = vld [vmem:[%s517_s3 + $0x38] sm:$0xff] }
   0x8   :  { %298 = vmatprep.subr.bf16.mxu1 %v297_v12 }
   0xb   :  { %300 = vmatpush3.bf16.msra.mxu1 %v299_v17 }
   0xc   :  { %302 = vmatprep.subr.bf16.mxu1 %v301_v18 }
   0xd   :  { %10 = vsyncpa [#allocation3], 0  ;;  %v137_v27 = vld [vmem:[%s517_s3 + $0xc0] sm:$0xff]  ;;  %v138_v28 = vld [vmem:[%s517_s3 + $0xc8] sm:$0xff]  ;;  %v307_v29 = vpack.c.bf16 %v120_v26, %v119_v25  ;;  %v26_v52 = vlaneseq }
   0xe   :  { %v309_v30 = vpack.c.bf16 %v138_v28, %v137_v27  ;;  %v121_v31 = vld [vmem:[%s517_s3 + $0x40] sm:$0xff]  ;;  %v122_v32 = vld [vmem:[%s517_s3 + $0x48] sm:$0xff]  ;;  %v139_v33 = vld [vmem:[%s517_s3 + $0xd0] sm:$0xff] }
   0xf   :  { %304 = vmatpush3.bf16.msra.mxu1 %v303_v23  ;;  %v140_v34 = vld [vmem:[%s517_s3 + $0xd8] sm:$0xff]  ;;  %v311_v35 = vpack.c.bf16 %v122_v32, %v121_v31  ;;  %v123_v37 = vld [vmem:[%s517_s3 + $0x50] sm:$0xff]  ;;  %v141_v39 = vld [vmem:[%s517_s3 + $0xe0] sm:$0xff]  ;;  %v27_v53 = vshrl.u32 %v26_v52, 7  ;;  %v223_v1 = vand.u32 127, %v26_v52 }
  0x10   :  { %306 = vmatprep.subr.bf16.mxu1 %v305_v24  ;;  %v313_v36 = vpack.c.bf16 %v140_v34, %v139_v33  ;;  %v124_v38 = vld [vmem:[%s517_s3 + $0x58] sm:$0xff]  ;;  %v142_v40 = vld [vmem:[%s517_s3 + $0xe8] sm:$0xff]  ;;  %v125_v43 = vld [vmem:[%s517_s3 + $0x60] sm:$0xff] }
  0x11   :  { %v315_v41 = vpack.c.bf16 %v124_v38, %v123_v37  ;;  %v317_v42 = vpack.c.bf16 %v142_v40, %v141_v39  ;;  %v126_v44 = vld [vmem:[%s517_s3 + $0x68] sm:$0xff]  ;;  %v143_v46 = vld [vmem:[%s517_s3 + $0xf0] sm:$0xff]  ;;  %v144_v47 = vld [vmem:[%s517_s3 + $0xf8] sm:$0xff]  ;;  %v28_v54 = vsub.s32 0, %v27_v53  ;;  %v32_v56 = vsub.s32 1, %v27_v53 }
  0x12   :  { %v319_v45 = vpack.c.bf16 %v126_v44, %v125_v43  ;;  %v321_v48 = vpack.c.bf16 %v144_v47, %v143_v46  ;;  %v127_v49 = vld [vmem:[%s517_s3 + $0x70] sm:$0xff]  ;;  %v128_v50 = vld [vmem:[%s517_s3 + $0x78] sm:$0xff]  ;;  %v24_v55 = vld [vmem:[%s516_s2] sm:$0x3]  ;;  %vm224_vm1 = vcmp.lt.s32.totalorder %v223_v1, 4  ;;  %vm238_vm2 = vcmp.eq.s32.totalorder %v223_v1, 4 }
  0x13   :  { %308 = vmatpush3.bf16.msra.mxu1 %v307_v29  ;;  %v323_v51 = vpack.c.bf16 %v128_v50, %v127_v49  ;;  %v29_v57 = vrot.slane %v24_v55, %v28_v54  ;;  %v33_v58 = vrot.slane %v24_v55, %v32_v56  ;;  %v257_v3 = vld [vmem:[%s518_s4] ss:$0 sm:$0xff]  ;;  %s356_s2 = smov [#allocation2]  }
  0x14   :  { %310 = vmatprep.subr.bf16.mxu1 %v309_v30  ;;  %s248_s4 = sshll.u32 %s356_s2, 4  ;;  %s249_s4 = int_to_ptr.vmem [resolvable:$true] %s248_s4 }
  0x15   :  { %s331_s10 = scalar_lea.vmem %s249_s4, 128  ;;  %p336_p1 = scmp.lt.s32.totalorder %s249_s4, %s249_s4 }
  0x16   :  { %p332_p0 = scmp.ne.s32.totalorder %s249_s4, %s331_s10  ;;  %p337_p2 = scmp.lt.s32.totalorder %s331_s10, %s331_s10 }
  0x17   :  { %312 = vmatpush3.bf16.msra.mxu1 %v311_v35 }
  0x18   :  { %314 = vmatprep.subr.bf16.mxu1 %v313_v36  ;;  %p338_p3 = por %p337_p2, %p336_p1 }
  0x1a   :  { %p339_p4 = pnand %p338_p3, %p332_p0 }
  0x1b   :  { %316 = vmatpush3.bf16.msra.mxu1 %v315_v41 }
  0x1c   :  { %318 = vmatprep.subr.bf16.mxu1 %v317_v42 }
  0x1f   :  { %320 = vmatpush3.bf16.msra.mxu1 %v319_v45 }
  0x20   :  { %322 = vmatprep.subr.bf16.mxu1 %v321_v48 }
  0x23   :  { %324 = vmatpush3.bf16.msra.mxu1 %v323_v51 }
  0xd7   :  { %v106_v59 = vpop.f32.mrb[0].mxu0 }
  0xd8   :  { %v107_v60 = vadd.f32 %v106_v59, %v29_v57  ;;  %v108_v61 = vpop.f32.mrb[1].mxu0 }
  0xd9   :  { %v109_v62 = vadd.f32 %v108_v61, %v33_v58 }
  0xda   :  { %v111_v0 = vmax.f32 %v107_v60, 0.0 }
  0xdb   :  { %v112_v63 = vmax.f32 %v109_v62, 0.0 }
  0xdd   :  { %216 = vmatprep.mubr.f32.mxu1 %v112_v63 }
  0xde   :  { %217 = vmatmul.mubr.f32.vlgmr.msra.gmra.mrb[0].mxu1 %v111_v0 }
 0x1b1   :  { %v290_v2 = vpop.f32.mrb[0].mxu1 }
 0x1b2   :  { %v291_v4 = vpop.f32.mrb[1].mxu1 }
 0x1b3   :  { %v292_v5 = vadd.f32 %v291_v4, %v290_v2 }
 0x1b5   :  { %v219_v6 = vadd.f32 %v292_v5, %v257_v3 }
 0x1b7   :  { %v225_v7 = vsel %vm224_vm1, %v219_v6, -inf  ;;  %v239_v18 = vsel %vm238_vm2, %v219_v6, 0.0 }
 0x1b8   :  { %v226_v8 = vsel %vm36_vm0, %v225_v7, -inf }
 0x1b9   :  { %227 = vmax.xlane.f32.xlu0 %v226_v8 }
 0x246   :  { %v228_v9 = vpop.xlane.xlu0 %227 }
 0x247   :  { %v229_v10 = vsub.f32 %v219_v6, %v228_v9 }
 0x249   :  { %v230_v11 = vsel %vm224_vm1, %v229_v10, -inf }
 0x24a   :  { %v231_v12 = vmul.f32 1.442695, %v230_v11 }
 0x24c   :  { %327 = vpow2.f32 %v231_v12 }
 0x256   :  { %v328_v13 = vpop.eup %327 }
 0x257   :  { %v233_v14 = vsel %vm36_vm0, %v328_v13, 0.0 }
 0x258   :  { %234 = vadd.xlane.f32.xlu0 %v233_v14 }
 0x2e5   :  { %v235_v15 = vpop.xlane.xlu0 %234 }
 0x2e6   :  { %329 = vrcp.f32 %v235_v15 }
 0x2f0   :  { %v330_v16 = vpop.eup %329 }
 0x2f1   :  { %v237_v17 = vmul.f32 %v330_v16, %v328_v13 }
 0x2f3   :  { %v240_v19 = vadd.f32 %v239_v18, %v237_v17 }
 0x2f5   :  { %241 = vst.msk [vmem:[#allocation2] sm:$0xff] %vm36_vm0, %v240_v19 }
 0x2f6   :  { %342 = shalt.err (!%p339_p4)
}
 0x2f7   :  { %s343_s13 = scalar_lea.hbm %s519_s5, 128 }
 0x2f8   :  { %p344_p5 = scmp.ne.s32.totalorder %s519_s5, %s343_s13  ;;  %p347_p6 = scmp.lt.u32.totalorder %s343_s13, %s519_s5 }
 0x2fa   :  { %p349_p7 = pnand %p347_p6, %p344_p5 }
 0x2fc   :  { %352 = shalt.err (!%p349_p7)
}
 0x2fd   :  { %251 = dma.vmem_to_hbm [thread:$0]  %s249_s4, 128, %s519_s5, [#allocation3]  }
 0x2fe   :  { %353 = dma.done.wait [#allocation3], 128  }
 0x2ff   :  { %354 = vsyncadd [#allocation3], 4294967168 }
 0x300   :  { %255 = vsyncpa [#allocation3], 1 }

</bundles_post_ra>
